<compile_context>
chip_gen: v7x
topology: tpu7x:2x2x1
jax: 0.10.0
libtpu: 0.0.40
codegen_flags: <defaults>
</compile_context>

<pallas_src>
import jax
import jax.numpy as jnp
from jax import lax
from jax.experimental import pallas as pl
from jax.experimental.pallas import tpu as pltpu


# ---------------------------------------------------------------------------
# Kernels
# ---------------------------------------------------------------------------
def dialog_rnn_step_kernel(z_ref, c_ref, w_ref, b_ref, out_ref):
    """Single round.  z = [x | h_prev] (B, in_dim+H); one fused MXU matmul.

    Fused weight columns are ordered [i | f | o | ada | g]: one sigmoid pass
    covers the first 4H (=128) lanes, one tanh covers the last H lanes.
    """
    z = z_ref[...].astype(jnp.float32)             # (B, in_dim+H)
    c = c_ref[...].astype(jnp.float32)             # (B, H)
    H = c.shape[-1]

    pre = (jnp.dot(z, w_ref[...], preferred_element_type=jnp.float32)
           + b_ref[...])                           # (B, 5H)

    sig = jax.nn.sigmoid(pre[:, 0:4 * H])          # [i | f | o | ada], one pass
    g_g = jnp.tanh(pre[:, 4 * H:5 * H])
    i_g = sig[:, 0:H]
    f_g = sig[:, H:2 * H]
    o_g = sig[:, 2 * H:3 * H]
    ada = sig[:, 3 * H:4 * H]

    c_new = f_g * c + i_g * g_g
    tanh_c = jnp.tanh(c_new)
    h_new = o_g * tanh_c
    query = ada * tanh_c                           # dropout (eval) == identity

    # single lane-dense store: [h | query | c | h] -> (B, 4H) (=128 lanes @ H=32)
    out_ref[...] = jnp.concatenate(
        [h_new, query, c_new, h_new], axis=-1).astype(out_ref.dtype)


def dialog_rnn_seq_kernel(xs_ref, h0_ref, c0_ref, w_ref, b_ref,
                          out_ref, state_ref):
    """All T rounds in one invocation: in-kernel unrolled recurrence.

    Weights/bias loaded + broadcast once (hoisted), h/c carried as fori_loop
    values, per-step packed (B, 4H) store into the (T, B, 4H) output slab,
    final (h, c) written from the f32 carries into a separate f32 output.
    """
    T = xs_ref.shape[0]
    B, H = h0_ref.shape

    # ---- loop-invariant loads / broadcasts (hoisted once)
    w = w_ref[...].astype(jnp.float32)                     # (in_dim+H, 5H)
    b = jnp.broadcast_to(b_ref[...], (B, 5 * H)).astype(jnp.float32)
    h0 = h0_ref[...].astype(jnp.float32)
    c0 = c0_ref[...].astype(jnp.float32)

    def step(t, carry):
        h, c = carry
        x = xs_ref[t].astype(jnp.float32)                  # (B, in_dim)
        z = jnp.concatenate([x, h], axis=-1)               # (B, in_dim+H)=128 ln
        pre = jnp.dot(z, w, preferred_element_type=jnp.float32) + b

        sig = jax.nn.sigmoid(pre[:, 0:4 * H])              # [i | f | o | ada]
        g_g = jnp.tanh(pre[:, 4 * H:5 * H])
        i_g = sig[:, 0:H]
        f_g = sig[:, H:2 * H]
        o_g = sig[:, 2 * H:3 * H]
        ada = sig[:, 3 * H:4 * H]

        c_new = f_g * c + i_g * g_g
        tanh_c = jnp.tanh(c_new)
        h_new = o_g * tanh_c
        query = ada * tanh_c

        packed = jnp.concatenate(
            [h_new, query, c_new, h_new], axis=-1).astype(out_ref.dtype)
        out_ref[pl.ds(t, 1)] = packed[None]
        return (h_new, c_new)

    h, c = lax.fori_loop(0, T, step, (h0, c0), unroll=True)
    # final recurrent state straight from the f32 carries (not the out slab)
    state_ref[...] = jnp.concatenate([h, c], axis=-1)


# ---------------------------------------------------------------------------
# One-time parameter fusion (setup, outside the jitted wrappers)
# ---------------------------------------------------------------------------
def fuse_params(params):
    """Transpose + fuse weights, pre-sum biases, and reorder gate columns to
    [i | f | o | ada | g] so the sigmoid gates occupy lanes 0:4H."""
    H = params["w_hh"].shape[1]
    wx = params["w_ih"].T          # (in_dim, 4H), column blocks [i|f|g|o]
    wh = params["w_hh"].T          # (H, 4H)
    wx_ada = params["w_i2h_1"].T   # (in_dim, H)
    wh_ada = params["w_h2h_1"].T   # (H, H)

    def reorder(w4, wada):
        i, f, g, o = (w4[:, 0:H], w4[:, H:2 * H],
                      w4[:, 2 * H:3 * H], w4[:, 3 * H:4 * H])
        return jnp.concatenate([i, f, o, wada, g], axis=1)  # (in, 5H)

    w_big = jnp.concatenate([reorder(wx, wx_ada),
                             reorder(wh, wh_ada)], axis=0)  # (in_dim+H, 5H)

    b4 = params["b_ih"] + params["b_hh"]                    # (4H,) [i|f|g|o]
    b_ada = params["b_i2h_1"] + params["b_h2h_1"]           # (H,)
    b = jnp.concatenate([b4[0:H], b4[H:2 * H], b4[3 * H:4 * H],
                         b_ada, b4[2 * H:3 * H]]).reshape(1, 5 * H)
    return {"w_big": w_big, "b": b}


def _round_up(n, m):
    return ((n + m - 1) // m) * m


# ---------------------------------------------------------------------------
# Wrappers
# ---------------------------------------------------------------------------
@jax.jit
def dialog_rnn_forward(img_feat, ques_emb, ans_emb, h_prev, c_prev, fused):
    """Single-round Pallas forward.  Returns (output, query, (h, c))."""
    B = img_feat.shape[0]
    H = h_prev.shape[1]
    Bp = _round_up(B, 8)   # fill sublanes -> unmasked vector stores

    z = jnp.concatenate([img_feat, ques_emb, ans_emb, h_prev], axis=1)
    if Bp != B:
        z = jnp.pad(z, ((0, Bp - B), (0, 0)))
        c_in = jnp.pad(c_prev, ((0, Bp - B), (0, 0)))
    else:
        c_in = c_prev

    vmem = pl.BlockSpec(memory_space=pltpu.MemorySpace.VMEM)
    packed = pl.pallas_call(
        dialog_rnn_step_kernel,
        out_shape=jax.ShapeDtypeStruct((Bp, 4 * H), img_feat.dtype),
        in_specs=[vmem, vmem, vmem, vmem],
        out_specs=vmem,
    )(z, c_in, fused["w_big"], fused["b"])

    packed = packed[:B]
    h_new = packed[:, 0:H]          # output == h (eval-mode dropout)
    query = packed[:, H:2 * H]
    c_new = packed[:, 2 * H:3 * H]
    return h_new, query, (h_new, c_new)


@jax.jit
def dialog_rnn_forward_seq(img_seq, ques_seq, ans_seq, h0, c0, fused):
    """T dialog rounds in ONE pallas_call (no grid).  Returns
    (outputs (T,B,H), queries (T,B,H), (h_T, c_T))."""
    xs = jnp.concatenate([img_seq, ques_seq, ans_seq], axis=-1)  # (T, B, in_dim)
    T, B, _ = xs.shape
    H = h0.shape[1]
    Bp = _round_up(B, 8)

    if Bp != B:
        xs = jnp.pad(xs, ((0, 0), (0, Bp - B), (0, 0)))
        h0p = jnp.pad(h0, ((0, Bp - B), (0, 0)))
        c0p = jnp.pad(c0, ((0, Bp - B), (0, 0)))
    else:
        h0p, c0p = h0, c0

    vmem = pl.BlockSpec(memory_space=pltpu.MemorySpace.VMEM)
    packed, state = pl.pallas_call(
        dialog_rnn_seq_kernel,
        out_shape=(jax.ShapeDtypeStruct((T, Bp, 4 * H), xs.dtype),
                   jax.ShapeDtypeStruct((Bp, 2 * H), jnp.float32)),
        in_specs=[vmem, vmem, vmem, vmem, vmem],
        out_specs=(vmem, vmem),
    )(xs, h0p, c0p, fused["w_big"], fused["b"])

    outputs = packed[:, :B, 0:H]
    queries = packed[:, :B, H:2 * H]
    h_last = state[:B, 0:H].astype(h0.dtype)
    c_last = state[:B, H:2 * H].astype(c0.dtype)
    return outputs, queries, (h_last, c_last)


# ---------------------------------------------------------------------------
# Parameters + pure-JAX references
# ---------------------------------------------------------------------------
def init_params(key, in_dim, hidden):
    """Deterministic synthetic parameters, PyTorch-default-style uniform init."""
    ks = jax.random.split(key, 8)
    bound = 1.0 / jnp.sqrt(hidden)

    def u(k, shape):
        return jax.random.uniform(k, shape, jnp.float32, -bound, bound)

    return {
        "w_ih": u(ks[0], (4 * hidden, in_dim)),   # nn.LSTMCell weight_ih
        "w_hh": u(ks[1], (4 * hidden, hidden)),   # nn.LSTMCell weight_hh
        "b_ih": u(ks[2], (4 * hidden,)),
        "b_hh": u(ks[3], (4 * hidden,)),
        "w_i2h_1": u(ks[4], (hidden, in_dim)),    # nn.Linear(in_dim, hidden)
        "b_i2h_1": u(ks[5], (hidden,)),
        "w_h2h_1": u(ks[6], (hidden, hidden)),    # nn.Linear(hidden, hidden)
        "b_h2h_1": u(ks[7], (hidden,)),
    }


def reference_forward(img_feat, ques_emb, ans_emb, h_prev, c_prev, p):
    """Pure-JAX mirror of the PyTorch forward (eval mode)."""
    x = jnp.concatenate([img_feat, ques_emb, ans_emb], axis=1)
    H = h_prev.shape[1]
    gates = x @ p["w_ih"].T + p["b_ih"] + h_prev @ p["w_hh"].T + p["b_hh"]
    i = jax.nn.sigmoid(gates[:, 0:H])
    f = jax.nn.sigmoid(gates[:, H:2 * H])
    g = jnp.tanh(gates[:, 2 * H:3 * H])
    o = jax.nn.sigmoid(gates[:, 3 * H:4 * H])
    c_new = f * c_prev + i * g
    h_new = o * jnp.tanh(c_new)
    ada = jax.nn.sigmoid(x @ p["w_i2h_1"].T + p["b_i2h_1"]
                         + h_prev @ p["w_h2h_1"].T + p["b_h2h_1"])
    return h_new, ada * jnp.tanh(c_new), (h_new, c_new)


def reference_forward_seq(img_seq, ques_seq, ans_seq, h0, c0, p):
    def step(carry, inp):
        h, c = carry
        img, q, a = inp
        out, query, (h2, c2) = reference_forward(img, q, a, h, c, p)
        return (h2, c2), (out, query)

    (hT, cT), (outs, queries) = jax.lax.scan(
        step, (h0, c0), (img_seq, ques_seq, ans_seq))
    return outs, queries, (hT, cT)


# ---------------------------------------------------------------------------
if __name__ == "__main__":
    # shapes implied by the module: rnnHiddenSize = quesEmbedSize = 32,
    # imgEmbedSize = ansEmbedSize = 32, speakerType = 'two_part' -> in_dim = 96
    B, H, IMG, ANS = 2, 32, 32, 32
    QUES = H
    IN_DIM = IMG + QUES + ANS
    T = 8   # dialog rounds for the sequence kernel

    key = jax.random.PRNGKey(0)
    (k_img, k_q, k_a, k_h, k_c, k_p,
     k_si, k_sq, k_sa) = jax.random.split(key, 9)

    img_feat = jax.random.normal(k_img, (B, IMG), jnp.float32)
    ques_emb = jax.random.normal(k_q, (B, QUES), jnp.float32)
    ans_emb = jax.random.normal(k_a, (B, ANS), jnp.float32)
    h0 = jax.random.normal(k_h, (B, H), jnp.float32)
    c0 = jax.random.normal(k_c, (B, H), jnp.float32)

    params = init_params(k_p, IN_DIM, H)
    fused = fuse_params(params)   # once, outside the jitted wrappers

    # ---- single-round kernel vs reference
    output, query, (h1, c1) = dialog_rnn_forward(
        img_feat, ques_emb, ans_emb, h0, c0, fused)
    jax.block_until_ready((output, query, h1, c1))

    ro, rq, (rh, rc) = reference_forward(img_feat, ques_emb, ans_emb, h0, c0, params)
    assert jnp.allclose(output, ro, atol=1e-5), "output mismatch"
    assert jnp.allclose(query, rq, atol=1e-5), "query mismatch"
    assert jnp.allclose(h1, rh, atol=1e-5), "hidden mismatch"
    assert jnp.allclose(c1, rc, atol=1e-5), "cell mismatch"

    # ---- multi-round (in-kernel unrolled recurrence) vs scanned reference
    img_seq = jax.random.normal(k_si, (T, B, IMG), jnp.float32)
    ques_seq = jax.random.normal(k_sq, (T, B, QUES), jnp.float32)
    ans_seq = jax.random.normal(k_sa, (T, B, ANS), jnp.float32)

    outs, queries, (hT, cT) = dialog_rnn_forward_seq(
        img_seq, ques_seq, ans_seq, h0, c0, fused)
    jax.block_until_ready((outs, queries, hT, cT))

    routs, rqueries, (rhT, rcT) = reference_forward_seq(
        img_seq, ques_seq, ans_seq, h0, c0, params)
    assert jnp.allclose(outs, routs, atol=1e-4), "seq output mismatch"
    assert jnp.allclose(queries, rqueries, atol=1e-4), "seq query mismatch"
    assert jnp.allclose(hT, rhT, atol=1e-4), "seq hidden mismatch"
    assert jnp.allclose(cT, rcT, atol=1e-4), "seq cell mismatch"

    print("KERNEL_OK")
</pallas_src>

<mosaic_0001>
module attributes {stable_mosaic.version = 11 : i64} {
  func.func @dialog_rnn_step_kernel(%arg0: memref<8x128xf32, #tpu.memory_space<vmem>>, %arg1: memref<8x32xf32, #tpu.memory_space<vmem>>, %arg2: memref<128x160xf32, #tpu.memory_space<vmem>>, %arg3: memref<1x160xf32, #tpu.memory_space<vmem>>, %arg4: memref<8x128xf32, #tpu.memory_space<vmem>>) attributes {dimension_semantics = [], scalar_prefetch = 0 : i64, scratch_operands = 0 : i64, tpu.core_type = #tpu.core_type<tc>} {
    %c0 = arith.constant 0 : index
    %c0_0 = arith.constant 0 : index
    %0 = vector.load %arg0[%c0, %c0_0] : memref<8x128xf32, #tpu.memory_space<vmem>>, vector<8x128xf32>
    %c0_1 = arith.constant 0 : index
    %c0_2 = arith.constant 0 : index
    %1 = vector.load %arg1[%c0_1, %c0_2] : memref<8x32xf32, #tpu.memory_space<vmem>>, vector<8x32xf32>
    %c0_3 = arith.constant 0 : index
    %c0_4 = arith.constant 0 : index
    %2 = vector.load %arg2[%c0_3, %c0_4] : memref<128x160xf32, #tpu.memory_space<vmem>>, vector<128x160xf32>
    %cst = arith.constant dense<0.000000e+00> : vector<8x160xf32>
    %3 = tpu.matmul %0, %2, %cst {dimension_numbers = #tpu.dot_dimension_numbers<[1], [0], [0], [1], [0, 0, 1, 1], [], []>} : vector<8x128xf32>, vector<128x160xf32>, vector<8x160xf32> -> vector<8x160xf32>
    %c0_5 = arith.constant 0 : index
    %c0_6 = arith.constant 0 : index
    %4 = vector.load %arg3[%c0_5, %c0_6] : memref<1x160xf32, #tpu.memory_space<vmem>>, vector<1x160xf32>
    %5 = vector.broadcast %4 : vector<1x160xf32> to vector<8x160xf32>
    %6 = arith.addf %3, %5 : vector<8x160xf32>
    %7 = vector.extract_strided_slice %6 {offsets = [0, 0], sizes = [8, 128], strides = [1, 1]} : vector<8x160xf32> to vector<8x128xf32>
    %8 = arith.negf %7 : vector<8x128xf32>
    %9 = math.exp %8 : vector<8x128xf32>
    %cst_7 = arith.constant 1.000000e+00 : f32
    %10 = vector.broadcast %cst_7 : f32 to vector<8x128xf32>
    %11 = arith.addf %10, %9 : vector<8x128xf32>
    %12 = arith.divf %10, %11 : vector<8x128xf32>
    %13 = vector.extract_strided_slice %6 {offsets = [0, 128], sizes = [8, 32], strides = [1, 1]} : vector<8x160xf32> to vector<8x32xf32>
    %14 = math.tanh %13 : vector<8x32xf32>
    %15 = vector.extract_strided_slice %12 {offsets = [0, 0], sizes = [8, 32], strides = [1, 1]} : vector<8x128xf32> to vector<8x32xf32>
    %16 = vector.extract_strided_slice %12 {offsets = [0, 32], sizes = [8, 32], strides = [1, 1]} : vector<8x128xf32> to vector<8x32xf32>
    %17 = vector.extract_strided_slice %12 {offsets = [0, 64], sizes = [8, 32], strides = [1, 1]} : vector<8x128xf32> to vector<8x32xf32>
    %18 = vector.extract_strided_slice %12 {offsets = [0, 96], sizes = [8, 32], strides = [1, 1]} : vector<8x128xf32> to vector<8x32xf32>
    %19 = arith.mulf %16, %1 : vector<8x32xf32>
    %20 = arith.mulf %15, %14 : vector<8x32xf32>
    %21 = arith.addf %19, %20 : vector<8x32xf32>
    %22 = math.tanh %21 : vector<8x32xf32>
    %23 = arith.mulf %17, %22 : vector<8x32xf32>
    %24 = arith.mulf %18, %22 : vector<8x32xf32>
    %25 = tpu.concatenate %23, %24, %21, %23 in 1 : vector<8x32xf32>, vector<8x32xf32>, vector<8x32xf32>, vector<8x32xf32> -> vector<8x128xf32>
    %c0_8 = arith.constant 0 : index
    %c0_9 = arith.constant 0 : index
    %26 = vector.load %arg4[%c0_8, %c0_9] : memref<8x128xf32, #tpu.memory_space<vmem>>, vector<8x128xf32>
    tpu.vector_store %arg4[%c0_8, %c0_9], %25 {strides = array<i32>} : memref<8x128xf32, #tpu.memory_space<vmem>>, vector<8x128xf32>,
    return
  }
}

</mosaic_0001>

<bundles_post_ra>
// kernel: dialog_rnn_forward.1
= control target key start
LH: loop header
LB: loop body
LE: loop exit
PB: predicated region body
PF: predicated region fallthrough
CT: control target
= control target key end

     0   :  { %v232_v3 = vmov 0.0   ;;  %s233_s27 = smov 32   ;;  %v53_v51 = vlaneseq  ;;  %vm177_vm0 = vcmask 261120   ;;  %vm179_vm1 = vcmask 523264   ;;  %s373_s2 = inlined_call_operand.vmem [shape: f32[128,160], index: 2, kind: input, shape index: {}]   ;;  %s374_s1 = inlined_call_operand.vmem [shape: f32[8,32], index: 1, kind: input, shape index: {}]   ;;  %s375_s0 = inlined_call_operand.vmem [shape: f32[8,128], index: 0, kind: input, shape index: {}]   ;;  %s376_s3 = inlined_call_operand.vmem [shape: f32[1,160], index: 3, kind: input, shape index: {}]   ;;  %s377_s4 = inlined_call_operand.vmem [shape: f32[8,128], index: 4, kind: output, shape index: {}]  }
   0x1   :  { %v20_v0 = vld [vmem:[%s373_s2 + $0x8] sm:$0xff]  ;;  %v22_v1 = vld [vmem:[%s373_s2 + $0x18] sm:$0xff]  ;;  %v19_v2 = vld [vmem:[%s373_s2] sm:$0xff]  ;;  %127 = vmatprep.mubr.f32.mxu0 %v232_v3  ;;  %vm181_vm2 = vcmask 785408  }
   0x2   :  { %v189_v4 = vpack.c.bf16 %v22_v1, %v20_v0  ;;  %v21_v5 = vld [vmem:[%s373_s2 + $0x10] sm:$0xff]  ;;  %v24_v6 = vld [vmem:[%s373_s2 + $0x28] sm:$0xff]  ;;  %v26_v7 = vld [vmem:[%s373_s2 + $0x38] sm:$0xff]  ;;  %v54_v52 = vshrl.u32 %v53_v51, 7 }
   0x3   :  { %v191_v8 = vpack.c.bf16 %v21_v5, %v19_v2  ;;  %v193_v9 = vpack.c.bf16 %v26_v7, %v24_v6  ;;  %v23_v10 = vld [vmem:[%s373_s2 + $0x20] sm:$0xff]  ;;  %v25_v11 = vld [vmem:[%s373_s2 + $0x30] sm:$0xff]  ;;  %v28_v12 = vld [vmem:[%s373_s2 + $0x48] sm:$0xff] }
   0x4   :  { %190 = vmatprep.subr.bf16.mxu0 %v189_v4  ;;  %v30_v13 = vld [vmem:[%s373_s2 + $0x58] sm:$0xff]  ;;  %v195_v14 = vpack.c.bf16 %v25_v11, %v23_v10  ;;  %v27_v16 = vld [vmem:[%s373_s2 + $0x40] sm:$0xff]  ;;  %v29_v17 = vld [vmem:[%s373_s2 + $0x50] sm:$0xff]  ;;  %v55_v53 = vsub.s32 0, %v54_v52  ;;  %v59_v60 = vsub.s32 1, %v54_v52 }
   0x5   :  { %192 = vmatpush1.bf16.msra.mxu0 %v191_v8  ;;  %v197_v15 = vpack.c.bf16 %v30_v13, %v28_v12  ;;  %v32_v18 = vld [vmem:[%s373_s2 + $0x68] sm:$0xff]  ;;  %v34_v19 = vld [vmem:[%s373_s2 + $0x78] sm:$0xff]  ;;  %v199_v20 = vpack.c.bf16 %v29_v17, %v27_v16  ;;  %v31_v22 = vld [vmem:[%s373_s2 + $0x60] sm:$0xff] }
   0x6   :  { %194 = vmatprep.subr.bf16.mxu0 %v193_v9  ;;  %v201_v21 = vpack.c.bf16 %v34_v19, %v32_v18  ;;  %v33_v23 = vld [vmem:[%s373_s2 + $0x70] sm:$0xff]  ;;  %v36_v24 = vld [vmem:[%s373_s2 + $0x88] sm:$0xff]  ;;  %v38_v25 = vld [vmem:[%s373_s2 + $0x98] sm:$0xff] }
   0x7   :  { %v18_v26 = vld [vmem:[%s374_s1] sm:$0xff]  ;;  %v203_v27 = vpack.c.bf16 %v33_v23, %v31_v22  ;;  %v205_v28 = vpack.c.bf16 %v38_v25, %v36_v24  ;;  %v37_v30 = vld [vmem:[%s373_s2 + $0x90] sm:$0xff]  ;;  %v40_v31 = vld [vmem:[%s373_s2 + $0xa8] sm:$0xff] }
   0x8   :  { %142 = vrot.lane.b32.xlu0 %v18_v26, %s233_s27  ;;  %v35_v29 = vld [vmem:[%s373_s2 + $0x80] sm:$0xff]  ;;  %v42_v32 = vld [vmem:[%s373_s2 + $0xb8] sm:$0xff]  ;;  %v41_v36 = vld [vmem:[%s373_s2 + $0xb0] sm:$0xff] }
   0x9   :  { %196 = vmatpush1.bf16.msra.mxu0 %v195_v14  ;;  %v207_v33 = vpack.c.bf16 %v37_v30, %v35_v29  ;;  %v209_v34 = vpack.c.bf16 %v42_v32, %v40_v31  ;;  %v39_v35 = vld [vmem:[%s373_s2 + $0xa0] sm:$0xff]  ;;  %v44_v37 = vld [vmem:[%s373_s2 + $0xc8] sm:$0xff]  ;;  %v46_v38 = vld [vmem:[%s373_s2 + $0xd8] sm:$0xff] }
   0xa   :  { %198 = vmatprep.subr.bf16.mxu0 %v197_v15  ;;  %v211_v39 = vpack.c.bf16 %v41_v36, %v39_v35  ;;  %v213_v40 = vpack.c.bf16 %v46_v38, %v44_v37  ;;  %v43_v41 = vld [vmem:[%s373_s2 + $0xc0] sm:$0xff]  ;;  %v45_v42 = vld [vmem:[%s373_s2 + $0xd0] sm:$0xff]  ;;  %v48_v43 = vld [vmem:[%s373_s2 + $0xe8] sm:$0xff] }
   0xb   :  { %v50_v44 = vld [vmem:[%s373_s2 + $0xf8] sm:$0xff]  ;;  %v215_v45 = vpack.c.bf16 %v45_v42, %v43_v41  ;;  %v47_v47 = vld [vmem:[%s373_s2 + $0xe0] sm:$0xff]  ;;  %v49_v48 = vld [vmem:[%s373_s2 + $0xf0] sm:$0xff] }
   0xc   :  { %v217_v46 = vpack.c.bf16 %v50_v44, %v48_v43  ;;  %v219_v49 = vpack.c.bf16 %v49_v48, %v47_v47  ;;  %v17_v50 = vld [vmem:[%s375_s0] sm:$0xff]  ;;  %s234_s0 = smov 64  }
   0xd   :  { %200 = vmatpush1.bf16.msra.mxu0 %v199_v20  ;;  %v51_v54 = vld [vmem:[%s376_s3] sm:$0x3] }
   0xe   :  { %202 = vmatprep.subr.bf16.mxu0 %v201_v21  ;;  %v56_v55 = vrot.slane %v51_v54, %v55_v53  ;;  %v60_v61 = vrot.slane %v51_v54, %v59_v60 }
  0x11   :  { %204 = vmatpush1.bf16.msra.mxu0 %v203_v27 }
  0x12   :  { %206 = vmatprep.subr.bf16.mxu0 %v205_v28 }
  0x15   :  { %208 = vmatpush1.bf16.msra.mxu0 %v207_v33 }
  0x16   :  { %210 = vmatprep.subr.bf16.mxu0 %v209_v34 }
  0x19   :  { %212 = vmatpush1.bf16.msra.mxu0 %v211_v39 }
  0x1a   :  { %214 = vmatprep.subr.bf16.mxu0 %v213_v40 }
  0x1d   :  { %216 = vmatpush1.bf16.msra.mxu0 %v215_v45 }
  0x1e   :  { %218 = vmatprep.subr.bf16.mxu0 %v217_v46 }
  0x21   :  { %220 = vmatpush1.bf16.msra.mxu0 %v219_v49 }
  0x24   :  { %128 = vmatmul.mubr.f32.vlgmr.msra.gmra.mrb[0].mxu0 %v17_v50 }
  0x7a   :  { %v143_v4 = vpop.permute.xlu0 %142 }
  0xf7   :  { %v129_v56 = vpop.f32.mrb[0].mxu0 }
  0xf8   :  { %v130_v57 = vadd.f32 %v129_v56, %v56_v55  ;;  %v131_v58 = vpop.f32.mrb[1].mxu0 }
  0xf9   :  { %v132_v62 = vadd.f32 %v131_v58, %v60_v61 }
  0xfa   :  { %v188_v59 = vmul.f32 -1.442695, %v130_v57 }
  0xfc   :  { %224 = vpow2.f32 %v188_v59 }
  0xfd   :  { %226 = vtanh.f32 %v132_v62 }
 0x106   :  { %v225_v63 = vpop.eup %224 }
 0x107   :  { %v137_v0 = vadd.f32 1.0, %v225_v63  ;;  %v227_v1 = vpop.eup %226 }
 0x109   :  { %228 = vrcp.f32 %v137_v0 }
 0x113   :  { %v229_v2 = vpop.eup %228 }
 0x114   :  { %v146_v3 = vmul.f32 %v229_v2, %v227_v1  ;;  %v145_v5 = vmul.f32 %v229_v2, %v143_v4 }
 0x116   :  { %148 = vrot.lane.b32.xlu0 %v146_v3, %s233_s27 }
 0x188   :  { %v149_v6 = vpop.permute.xlu0 %148 }
 0x189   :  { %v151_v7 = vadd.f32 %v149_v6, %v145_v5 }
 0x18b   :  { %230 = vtanh.f32 %v151_v7 }
 0x195   :  { %v231_v8 = vpop.eup %230 }
 0x196   :  { %154 = vrot.lane.b32.xlu1 %v231_v8, %s233_s27 }
 0x19a   :  { %158 = vrot.lane.b32.xlu1 %v231_v8, %s234_s0 }
 0x208   :  { %v155_v9 = vpop.permute.xlu1 %154 }
 0x209   :  { %v157_v10 = vmul.f32 %v229_v2, %v155_v9 }
 0x20b   :  { %163 = vrot.lane.b32.xlu0 %v157_v10, %s234_s0 }
 0x20c   :  { %v159_v11 = vpop.permute.xlu1 %158 }
 0x20d   :  { %v161_v12 = vmul.f32 %v229_v2, %v159_v11 }
 0x20f   :  { %171 = vrot.lane.b32.xlu0 %v151_v7, %s233_s27  ;;  %167 = vrot.lane.b32.xlu1 %v161_v12, %s234_s0 }
 0x213   :  { %174 = vrot.lane.b32.xlu1 %v157_v10, %s233_s27 }
 0x27d   :  { %v164_v13 = vpop.permute.xlu0 %163 }
 0x281   :  { %v168_v14 = vpop.permute.xlu1 %167  ;;  %v172_v15 = vpop.permute.xlu0 %171 }
 0x282   :  { %v178_v16 = vsel %vm177_vm0, %v164_v13, %v168_v14 }
 0x283   :  { %v180_v17 = vsel %vm179_vm1, %v178_v16, %v172_v15 }
 0x285   :  { %v175_v18 = vpop.permute.xlu1 %174 }
 0x286   :  { %v182_v19 = vsel %vm181_vm2, %v180_v17, %v175_v18 }
 0x287   :  { %183 = vst [vmem:[%s377_s4] sm:$0xff] %v182_v19 }

</bundles_post_ra>
